<compile_context>
chip_gen: v7x
topology: tpu7x:2x2x1
jax: 0.10.0
libtpu: 0.0.40
codegen_flags: <defaults>
</compile_context>

<pallas_src>
import jax
import jax.numpy as jnp
from jax.experimental import pallas as pl
from jax.experimental.pallas import tpu as pltpu

_SUBLANE = 8


def _round_up(x, m):
    return ((x + m - 1) // m) * m


def _dan_linear_kernel(x_ref, wb_ref, o_ref):
    # One (TM, K) batch tile: y = x @ W + b.  MXU matmul with f32
    # accumulation; bias row broadcast-added over the batch (sublane) axis on
    # the VPU.  wb_ref packs [W ; b] (tiny, resident via constant index_map),
    # so there is no separate bias DMA.
    k = wb_ref.shape[0] - 1
    x = x_ref[...]
    w = wb_ref[:k, :]                       # (K, N) weight block
    b = wb_ref[k:, :]                       # (1, N) bias row
    y = jnp.dot(x, w, preferred_element_type=jnp.float32) + b
    o_ref[...] = y.astype(o_ref.dtype)      # exact (TM, N) store, no padding


def _choose_tm(batch, block_m, *, min_steps=4):
    """Pick the batch-tile size.

    Large enough to amortize per-grid-step overhead (v5e/v6e), but capped so
    mid-size batches still get >= `min_steps` grid steps, which lets v7x's two
    TensorCores share the "parallel" grid axis.  Huge batches are limited by
    `block_m`; tiny batches get a single sublane-rounded tile.
    """
    tm = min(block_m, _round_up(batch, _SUBLANE))
    if batch > min_steps * _SUBLANE:
        cap = _round_up(pl.cdiv(batch, min_steps), _SUBLANE)
        tm = min(tm, cap)
    return max(tm, _SUBLANE)


def dan_forward(x, weight, bias, *, block_m=1024):
    """y = x @ weight + bias   (== nn.Linear(in_features, 2) forward).

    x:      (batch, in_features)  float32
    weight: (in_features, out_features)   (== W^T of the PyTorch layout)
    bias:   (out_features,)
    """
    batch, k = x.shape
    n = weight.shape[1]

    # Fold bias into an extra row of the small resident weight operand.
    wb = jnp.concatenate(
        [weight.astype(jnp.float32), bias.astype(jnp.float32).reshape(1, n)],
        axis=0,
    )  # (K+1, N), ~a few hundred bytes

    tm = _choose_tm(batch, block_m)
    grid_m = pl.cdiv(batch, tm)   # ragged last tile handled by Pallas

    cost = pl.CostEstimate(
        flops=2 * batch * k * n,
        transcendentals=0,
        bytes_accessed=batch * k * 4 + batch * n * 4 + (k + 1) * n * 4,
    )

    out = pl.pallas_call(
        _dan_linear_kernel,
        out_shape=jax.ShapeDtypeStruct((batch, n), jnp.float32),
        grid=(grid_m,),
        in_specs=[
            # x: one (TM, K) batch tile per grid step (double-buffered).
            pl.BlockSpec((tm, k), lambda i: (i, 0)),
            # [W ; b]: constant block index -> stays resident in VMEM, f32.
            pl.BlockSpec((k + 1, n), lambda i: (0, 0)),
        ],
        # Exact-sized output block: last dim == full array dim (legal even
        # though 2 < 128); OOB rows of the ragged last tile are dropped.
        out_specs=pl.BlockSpec((tm, n), lambda i: (i, 0)),
        compiler_params=pltpu.CompilerParams(
            dimension_semantics=("parallel",),   # batch tiles are independent
            vmem_limit_bytes=32 * 1024 * 1024,   # safe on v7x's smaller VMEM
        ),
        cost_estimate=cost,
    )(x.astype(jnp.float32), wb)

    return out


def make_dan_params(key, data_type="embed"):
    """Deterministic init matching nn.Linear(in, 2): U(-1/sqrt(in), 1/sqrt(in))."""
    in_features = 50 if data_type == "embed" else 1
    out_features = 2
    kw, kb = jax.random.split(key)
    bound = 1.0 / jnp.sqrt(jnp.float32(in_features))
    # Stored as (in_features, out_features) == W^T of the PyTorch layout.
    weight = jax.random.uniform(
        kw, (in_features, out_features), jnp.float32, -bound, bound
    )
    bias = jax.random.uniform(kb, (out_features,), jnp.float32, -bound, bound)
    return weight, bias


if __name__ == "__main__":
    key = jax.random.PRNGKey(0)
    k_x, k_p = jax.random.split(key)

    data_type = "embed"                   # input_size = 50
    batch = 8
    in_features = 50 if data_type == "embed" else 1

    x = jax.random.normal(k_x, (batch, in_features), jnp.float32)
    weight, bias = make_dan_params(k_p, data_type)

    # Small-shape run (single batch tile).
    y = jax.block_until_ready(dan_forward(x, weight, bias))
    y_ref = x @ weight + bias
    assert y.shape == (batch, 2)
    assert jnp.allclose(y, y_ref, atol=1e-5, rtol=1e-5)

    # Exercise the tiled path: cdiv grid > 1 with a ragged last tile and no
    # wrapper padding of x or the output.
    x_big = jax.random.normal(jax.random.PRNGKey(1), (200, in_features), jnp.float32)
    y_big = jax.block_until_ready(dan_forward(x_big, weight, bias, block_m=64))
    y_big_ref = x_big @ weight + bias
    assert y_big.shape == (200, 2)
    assert jnp.allclose(y_big, y_big_ref, atol=1e-5, rtol=1e-5)

    print("KERNEL_OK")
</pallas_src>

<mosaic_0001>
module attributes {stable_mosaic.version = 11 : i64} {
  func.func @_dan_linear_kernel(%arg0: i32, %arg1: memref<8x50xf32, #tpu.memory_space<vmem>>, %arg2: memref<51x2xf32, #tpu.memory_space<vmem>>, %arg3: memref<8x2xf32, #tpu.memory_space<vmem>>) attributes {dimension_semantics = [#tpu.dimension_semantics<parallel>], iteration_bounds = array<i64: 1>, scalar_prefetch = 0 : i64, scratch_operands = 0 : i64, tpu.core_type = #tpu.core_type<tc>, window_params = [{transform_indices = @transform_0, window_bounds = array<i64: 8, 50>}, {pipeline_mode = #tpu.pipeline_mode<synchronous>, transform_indices = @transform_1, window_bounds = array<i64: 51, 2>}, {transform_indices = @transform_2, window_bounds = array<i64: 8, 2>}]} {
    %c0 = arith.constant 0 : index
    %c0_0 = arith.constant 0 : index
    %0 = vector.load %arg1[%c0, %c0_0] : memref<8x50xf32, #tpu.memory_space<vmem>>, vector<8x50xf32>
    %c0_1 = arith.constant 0 : index
    %c0_2 = arith.constant 0 : index
    %1 = vector.load %arg2[%c0_1, %c0_2] : memref<51x2xf32, #tpu.memory_space<vmem>>, vector<50x2xf32>
    %c50 = arith.constant 50 : index
    %c0_3 = arith.constant 0 : index
    %2 = vector.load %arg2[%c50, %c0_3] : memref<51x2xf32, #tpu.memory_space<vmem>>, vector<1x2xf32>
    %cst = arith.constant dense<0.000000e+00> : vector<8x2xf32>
    %3 = tpu.matmul %0, %1, %cst {dimension_numbers = #tpu.dot_dimension_numbers<[1], [0], [0], [1], [0, 0, 1, 1], [], []>} : vector<8x50xf32>, vector<50x2xf32>, vector<8x2xf32> -> vector<8x2xf32>
    %4 = vector.broadcast %2 : vector<1x2xf32> to vector<8x2xf32>
    %5 = arith.addf %3, %4 : vector<8x2xf32>
    %c0_4 = arith.constant 0 : index
    %c0_5 = arith.constant 0 : index
    %6 = vector.load %arg3[%c0_4, %c0_5] : memref<8x2xf32, #tpu.memory_space<vmem>>, vector<8x2xf32>
    tpu.vector_store %arg3[%c0_4, %c0_5], %5 {strides = array<i32>} : memref<8x2xf32, #tpu.memory_space<vmem>>, vector<8x2xf32>,
    return
  }
  func.func @transform_0(%arg0: i32) -> (i32, i32) {
    %c0_i32 = arith.constant 0 : i32
    %c0_i32_0 = arith.constant 0 : i32
    return %arg0, %c0_i32 : i32, i32
  }
  func.func @transform_1(%arg0: i32) -> (i32, i32) {
    %c0_i32 = arith.constant 0 : i32
    %c0_i32_0 = arith.constant 0 : i32
    %c0_i32_1 = arith.constant 0 : i32
    return %c0_i32, %c0_i32_0 : i32, i32
  }
  func.func @transform_2(%arg0: i32) -> (i32, i32) {
    %c0_i32 = arith.constant 0 : i32
    %c0_i32_0 = arith.constant 0 : i32
    return %arg0, %c0_i32 : i32, i32
  }
}

</mosaic_0001>

<bundles_post_ra>
// kernel: tpu_custom_call.1
= control target key start
LH: loop header
LB: loop body
LE: loop exit
PB: predicated region body
PF: predicated region fallthrough
CT: control target
= control target key end

     0   :  { %v148_v0 = vmov 0.0|0.0   ;;  %vm149_vm0 = vmmov 0   ;;  %v150_v4 = vmov 0.0   ;;  %vm28_vm1 = vcmask 1041408   ;;  %s196_s1 = inlined_call_operand.vmem [shape: f32[51,2], index: 1, kind: input, shape index: {}]   ;;  %s197_s0 = inlined_call_operand.vmem [shape: f32[8,50], index: 0, kind: input, shape index: {}]   ;;  %s198_s2 = inlined_call_operand.vmem [shape: f32[8,2], index: 2, kind: output, shape index: {}]  }
   0x1   :  { %136 = vmatprep.subr.bf16.mxu0 %v148_v0  ;;  %v12_v1 = vld [vmem:[%s196_s1] sm:$0xff]  ;;  %v13_v2 = vld [vmem:[%s196_s1 + $0x8] sm:$0xff]  ;;  %v14_v3 = vld [vmem:[%s196_s1 + $0x10] sm:$0xff]  ;;  %133 = vmatprep.mubr.msk.f32.mxu0 %vm149_vm0, %v150_v4  ;;  %vm24_vm2 = vcmask 408576   ;;  %vm102_vm3 = vcmask 15360  }
   0x2   :  { %v137_v5 = vpack.c.bf16 %v13_v2, %v12_v1  ;;  %v15_v6 = vld [vmem:[%s196_s1 + $0x18] sm:$0xff]  ;;  %v16_v8 = vld [vmem:[%s196_s1 + $0x20] sm:$0xff]  ;;  %v17_v9 = vld [vmem:[%s196_s1 + $0x28] sm:$0xff] }
   0x3   :  { %v140_v7 = vpack.c.bf16 %v15_v6, %v14_v3  ;;  %v143_v10 = vpack.c.bf16 %v17_v9, %v16_v8  ;;  %v18_v11 = vld [vmem:[%s196_s1 + $0x30] sm:$0x3]  ;;  %v11_v12 = vld [vmem:[%s197_s0] sm:$0xff]  ;;  %v108_v13 = vld [vmem:[%s196_s1 + $0x32] ss:$0 sm:$0xff] }
   0x4   :  { %138 = vmatpush3.bf16.msra.mxu0 %v137_v5 }
   0x5   :  { %139 = vmatprep.subr.bf16.mxu0 %v148_v0 }
   0x8   :  { %141 = vmatpush3.bf16.msra.mxu0 %v140_v7 }
   0x9   :  { %142 = vmatprep.subr.bf16.mxu0 %v148_v0 }
   0xc   :  { %144 = vmatpush3.bf16.msra.mxu0 %v143_v10 }
   0xd   :  { %131 = vmatprep.subr.mxu0 %v150_v4 }
  0x10   :  { %132 = vmatpush3.msk.msra.mxu0 %vm28_vm1, %v18_v11 }
  0x11   :  { %134 = vmatmul.mubr.msk.f32.vlgmr.msra.gmra.mrb[0].mxu0 %vm24_vm2, %v11_v12 }
  0xe4   :  { %v98_v14 = vpop.f32.mrb[0].mxu0 }
  0xe5   :  { %v99_v15 = vadd.f32 %v108_v13, %v98_v14  ;;  %v135_v16 = vpop.f32.mrb[1].mxu0 }
  0xe7   :  { %103 = vst.msk [vmem:[%s198_s2] sm:$0xff] %vm102_vm3, %v99_v15 }

</bundles_post_ra>
